<compile_context>
chip_gen: v7x
topology: tpu7x:2x2x1
jax: 0.10.0
libtpu: 0.0.40
codegen_flags: <defaults>
</compile_context>

<pallas_src>
import jax
import jax.numpy as jnp
from jax import lax
from jax.experimental import pallas as pl
from jax.experimental.pallas import tpu as pltpu

EPS = 1e-5  # nn.InstanceNorm2d default eps (affine=False, no running stats)


def _fsconv_kernel(w_ref, cols_ref, o_ref, sum_ref, sq_ref):
    """One grid step = one spatial tile of one sample.

    w_ref    : (4*Cout, 4*Cin)    bf16  sub-pixel weight matrix (resident)
    cols_ref : (4*Cin, TP)        bf16  2x2-patch columns for this spatial tile
    o_ref    : (n_pt, 4*Cout, TP) f32   per-sample output, resident across the P axis
    sum_ref  : (4*Cout, 1)        f32   streamed per-(phase, channel) sum
    sq_ref   : (4*Cout, 1)        f32   streamed per-(phase, channel) sum of squares
    """
    p = pl.program_id(1)
    n_pt = pl.num_programs(1)

    @pl.when(p == 0)
    def _init():
        sum_ref[...] = jnp.zeros_like(sum_ref)
        sq_ref[...] = jnp.zeros_like(sq_ref)

    # Transposed-conv hot path: one bf16 MXU matmul, f32 accumulation.
    y = jnp.dot(w_ref[...], cols_ref[...], preferred_element_type=jnp.float32)

    # Streamed single-pass statistics (lane reduction per tile).
    sum_ref[...] += jnp.sum(y, axis=1, keepdims=True)
    sq_ref[...] += jnp.sum(y * y, axis=1, keepdims=True)

    # Stash the pre-norm tile in the resident per-sample output block.
    o_ref[p] = y

    @pl.when(p == n_pt - 1)
    def _finalize():
        n_tiles, c4, tp = o_ref.shape
        c = c4 // 4                      # Cout
        count = 4.0 * n_tiles * tp       # = Ho * Wo elements per (sample, channel)
        s = sum_ref[...]
        q = sq_ref[...]
        # Combine the 4 phases of each output channel (rows are phase-major).
        ch_sum = s[0:c] + s[c:2 * c] + s[2 * c:3 * c] + s[3 * c:4 * c]
        ch_sq = q[0:c] + q[c:2 * c] + q[2 * c:3 * c] + q[3 * c:4 * c]
        mean = ch_sum / count
        var = ch_sq / count - mean * mean
        scale = lax.rsqrt(var + EPS)
        mean4 = jnp.concatenate([mean, mean, mean, mean], axis=0)     # (4*Cout, 1)
        scale4 = jnp.concatenate([scale, scale, scale, scale], axis=0)
        y_all = o_ref[...]                                            # (n_pt, 4*Cout, TP)
        o_ref[...] = jnp.maximum((y_all - mean4) * scale4, 0.0)


def _choose_tp(P, K):
    """Spatial tile length: a lane-aligned (multiple of 128) divisor of P that keeps
    the bf16 cols tile small and leaves >= 2 tiles so cols DMA overlaps compute."""
    if P % 128 != 0:
        return P                      # full extent is always a legal block
    tp = 128
    for cand in (256, 512, 1024, 2048, 4096):
        if P % cand == 0 and P // cand >= 2 and cand * K * 2 <= (4 << 20):
            tp = cand
    return tp


def fractional_strided_conv_block(x, w_t, b=None):
    """Forward pass of FractionalStridedConvBlock.

    x   : (N, Cin, H, W)     float32 (NCHW, like PyTorch)
    w_t : (Cin, Cout, 3, 3)  ConvTranspose2d weight (PyTorch layout)
    b   : (Cout,)            ConvTranspose2d bias -- unused: a per-channel bias
                             cancels exactly under InstanceNorm2d(affine=False).
    returns (N, Cout, 2H, 2W) float32
    """
    del b
    N, Cin, H, W = x.shape
    Cout = w_t.shape[1]
    P = H * W
    K = 4 * Cin
    C4 = 4 * Cout

    # ---- sub-pixel weight matrix (plain JAX, tiny) ---------------------------
    w = w_t.astype(jnp.float32)
    z = jnp.zeros((Cin, Cout), jnp.float32)
    t = lambda ky, kx: w[:, :, ky, kx]
    # rows: 2x2 input patch positions p0=(i,j) p1=(i,j+1) p2=(i+1,j) p3=(i+1,j+1)
    # cols: output phases (ry,rx) = (0,0) (0,1) (1,0) (1,1)
    w_big = jnp.block([
        [t(1, 1), t(1, 2), t(2, 1), t(2, 2)],   # p0
        [z,       t(1, 0), z,       t(2, 0)],   # p1
        [z,       z,       t(0, 1), t(0, 2)],   # p2
        [z,       z,       z,       t(0, 0)],   # p3
    ])                                           # (4*Cin, 4*Cout)
    w_big_t = w_big.T.astype(jnp.bfloat16)       # (4*Cout, 4*Cin)

    # ---- 2x2-patch columns: channels on sublanes, spatial on lanes -----------
    xp = jnp.pad(x.astype(jnp.float32), ((0, 0), (0, 0), (0, 1), (0, 1)))
    cols = jnp.concatenate(
        [xp[:, :, :H, :W], xp[:, :, :H, 1:W + 1],
         xp[:, :, 1:H + 1, :W], xp[:, :, 1:H + 1, 1:W + 1]], axis=1)
    cols = cols.reshape(N, K, P).astype(jnp.bfloat16)        # (N, 4*Cin, H*W)

    TP = _choose_tp(P, K)
    n_pt = P // TP

    # Explicit VMEM budget so bigger shapes fail loudly instead of silently
    # thrashing the default scoped limit.
    vmem_est = (2 * K * TP * 2          # cols tiles (bf16, double buffered)
                + 2 * C4 * P * 4        # resident output block (+ writeback buffer)
                + 2 * C4 * K * 2        # weights
                + 2 * C4 * 128 * 4      # stats scratch (lane padded)
                + (1 << 20))
    vmem_limit = int(min(100 * 1024 * 1024, max(32 * 1024 * 1024, 2 * vmem_est)))

    out_flat = pl.pallas_call(
        _fsconv_kernel,
        out_shape=jax.ShapeDtypeStruct((N, n_pt, C4, TP), jnp.float32),
        grid=(N, n_pt),
        in_specs=[
            pl.BlockSpec((C4, K), lambda n, p: (0, 0)),            # weights (resident)
            pl.BlockSpec((None, K, TP), lambda n, p: (n, 0, p)),   # cols tile
        ],
        out_specs=pl.BlockSpec((None, n_pt, C4, TP), lambda n, p: (n, 0, 0, 0)),
        scratch_shapes=[
            pltpu.VMEM((C4, 1), jnp.float32),                      # sum
            pltpu.VMEM((C4, 1), jnp.float32),                      # sum of squares
        ],
        compiler_params=pltpu.CompilerParams(
            dimension_semantics=("parallel", "arbitrary"),
            vmem_limit_bytes=vmem_limit,
        ),
        cost_estimate=pl.CostEstimate(
            flops=2 * N * C4 * K * P,
            transcendentals=0,
            bytes_accessed=cols.size * 2 + w_big_t.size * 2 + N * C4 * P * 4,
        ),
    )(w_big_t, cols)

    # Depth-to-space + back to NCHW (plain XLA; fuses into a single transpose).
    out = out_flat.reshape(N, n_pt, 2, 2, Cout, TP)
    out = jnp.transpose(out, (0, 4, 1, 5, 2, 3))     # (N, Cout, n_pt, TP, ry, rx)
    out = out.reshape(N, Cout, H, W, 2, 2)
    out = jnp.transpose(out, (0, 1, 2, 4, 3, 5))     # (N, Cout, H, ry, W, rx)
    return out.reshape(N, Cout, 2 * H, 2 * W)


def _reference(x, w_t, b):
    """Pure-JAX reference (matches the PyTorch module) for verification."""
    w_conv = jnp.transpose(jnp.flip(w_t, axis=(2, 3)), (1, 0, 2, 3))  # (Cout,Cin,3,3)
    y = lax.conv_general_dilated(
        x, w_conv, window_strides=(1, 1), padding=[(1, 2), (1, 2)],
        lhs_dilation=(2, 2), dimension_numbers=("NCHW", "OIHW", "NCHW"),
        precision=lax.Precision.HIGHEST)
    y = y + b[None, :, None, None]
    mean = jnp.mean(y, axis=(2, 3), keepdims=True)
    var = jnp.mean(jnp.square(y - mean), axis=(2, 3), keepdims=True)
    y = (y - mean) / jnp.sqrt(var + EPS)
    return jnp.maximum(y, 0.0)


if __name__ == "__main__":
    N, Cin, Cout, H, W = 2, 4, 8, 16, 16

    key = jax.random.PRNGKey(0)
    kx, kw, kb = jax.random.split(key, 3)
    x = jax.random.normal(kx, (N, Cin, H, W), dtype=jnp.float32)
    w_t = 0.1 * jax.random.normal(kw, (Cin, Cout, 3, 3), dtype=jnp.float32)
    bias = 0.1 * jax.random.normal(kb, (Cout,), dtype=jnp.float32)

    fwd = jax.jit(fractional_strided_conv_block)
    out = jax.block_until_ready(fwd(x, w_t, bias))
    assert out.shape == (N, Cout, 2 * H, 2 * W), out.shape

    # Reference on bf16-rounded operands (the kernel feeds the MXU bf16 inputs with
    # f32 accumulation), isolating kernel error from quantization error.  The
    # reference keeps the bias; the kernel drops it (InstanceNorm cancels it).
    xq = x.astype(jnp.bfloat16).astype(jnp.float32)
    wq = w_t.astype(jnp.bfloat16).astype(jnp.float32)
    ref = _reference(xq, wq, bias)
    err = float(jnp.max(jnp.abs(out - ref)))
    assert jnp.allclose(out, ref, atol=3e-3, rtol=3e-3), err
    print("KERNEL_OK")
</pallas_src>

<mosaic_0001>
module attributes {stable_mosaic.version = 11 : i64} {
  func.func @_fsconv_kernel(%arg0: i32, %arg1: i32, %arg2: memref<32x16xbf16, #tpu.memory_space<vmem>>, %arg3: memref<1x16x128xbf16, #tpu.memory_space<vmem>>, %arg4: memref<1x2x32x128xf32, #tpu.memory_space<vmem>>, %arg5: memref<32x1xf32, #tpu.memory_space<vmem>>, %arg6: memref<32x1xf32, #tpu.memory_space<vmem>>) attributes {dimension_semantics = [#tpu.dimension_semantics<parallel>, #tpu.dimension_semantics<arbitrary>], iteration_bounds = array<i64: 2, 2>, scalar_prefetch = 0 : i64, scratch_operands = 2 : i64, tpu.core_type = #tpu.core_type<tc>, window_params = [{pipeline_mode = #tpu.pipeline_mode<synchronous>, transform_indices = @transform_0, window_bounds = array<i64: 32, 16>}, {transform_indices = @transform_1, window_bounds = array<i64: 1, 16, 128>}, {transform_indices = @transform_2, window_bounds = array<i64: 1, 2, 32, 128>}]} {
    %c0_i32 = arith.constant 0 : i32
    %0 = arith.cmpi eq, %arg1, %c0_i32 : i32
    %1 = arith.extui %0 : i1 to i32
    %c0_i32_0 = arith.constant 0 : i32
    %2 = arith.cmpi ne, %1, %c0_i32_0 : i32
    scf.if %2 {
      %cst_19 = arith.constant 0.000000e+00 : f32
      %25 = vector.broadcast %cst_19 : f32 to vector<32x1xf32>
      %c0_20 = arith.constant 0 : index
      %c0_21 = arith.constant 0 : index
      %26 = vector.load %arg5[%c0_20, %c0_21] : memref<32x1xf32, #tpu.memory_space<vmem>>, vector<32x1xf32>
      tpu.vector_store %arg5[%c0_20, %c0_21], %25 {strides = array<i32>} : memref<32x1xf32, #tpu.memory_space<vmem>>, vector<32x1xf32>,
      %cst_22 = arith.constant 0.000000e+00 : f32
      %27 = vector.broadcast %cst_22 : f32 to vector<32x1xf32>
      %c0_23 = arith.constant 0 : index
      %c0_24 = arith.constant 0 : index
      %28 = vector.load %arg6[%c0_23, %c0_24] : memref<32x1xf32, #tpu.memory_space<vmem>>, vector<32x1xf32>
      tpu.vector_store %arg6[%c0_23, %c0_24], %27 {strides = array<i32>} : memref<32x1xf32, #tpu.memory_space<vmem>>, vector<32x1xf32>,
    } else {
    }
    %c0 = arith.constant 0 : index
    %c0_1 = arith.constant 0 : index
    %3 = vector.load %arg2[%c0, %c0_1] : memref<32x16xbf16, #tpu.memory_space<vmem>>, vector<32x16xbf16>
    %c0_2 = arith.constant 0 : index
    %c0_3 = arith.constant 0 : index
    %c0_4 = arith.constant 0 : index
    %4 = vector.load %arg3[%c0_2, %c0_3, %c0_4] : memref<1x16x128xbf16, #tpu.memory_space<vmem>>, vector<1x16x128xbf16>
    %5 = vector.shape_cast %4 : vector<1x16x128xbf16> to vector<16x128xbf16>
    %cst = arith.constant dense<0.000000e+00> : vector<32x128xf32>
    %6 = tpu.matmul %3, %5, %cst {dimension_numbers = #tpu.dot_dimension_numbers<[1], [0], [0], [1], [0, 0, 1, 1], [], []>} : vector<32x16xbf16>, vector<16x128xbf16>, vector<32x128xf32> -> vector<32x128xf32>
    %c0_5 = arith.constant 0 : index
    %c0_6 = arith.constant 0 : index
    %7 = vector.load %arg5[%c0_5, %c0_6] : memref<32x1xf32, #tpu.memory_space<vmem>>, vector<32x1xf32>
    %cst_7 = arith.constant dense<0.000000e+00> : vector<32xf32>
    %8 = vector.multi_reduction <add>, %6, %cst_7 [1] : vector<32x128xf32> to vector<32xf32>
    %9 = vector.shape_cast %8 : vector<32xf32> to vector<32x1xf32>
    %10 = arith.addf %7, %9 : vector<32x1xf32>
    %c0_8 = arith.constant 0 : index
    %c0_9 = arith.constant 0 : index
    %11 = vector.load %arg5[%c0_8, %c0_9] : memref<32x1xf32, #tpu.memory_space<vmem>>, vector<32x1xf32>
    tpu.vector_store %arg5[%c0_8, %c0_9], %10 {strides = array<i32>} : memref<32x1xf32, #tpu.memory_space<vmem>>, vector<32x1xf32>,
    %c0_10 = arith.constant 0 : index
    %c0_11 = arith.constant 0 : index
    %12 = vector.load %arg6[%c0_10, %c0_11] : memref<32x1xf32, #tpu.memory_space<vmem>>, vector<32x1xf32>
    %13 = arith.mulf %6, %6 : vector<32x128xf32>
    %cst_12 = arith.constant dense<0.000000e+00> : vector<32xf32>
    %14 = vector.multi_reduction <add>, %13, %cst_12 [1] : vector<32x128xf32> to vector<32xf32>
    %15 = vector.shape_cast %14 : vector<32xf32> to vector<32x1xf32>
    %16 = arith.addf %12, %15 : vector<32x1xf32>
    %c0_13 = arith.constant 0 : index
    %c0_14 = arith.constant 0 : index
    %17 = vector.load %arg6[%c0_13, %c0_14] : memref<32x1xf32, #tpu.memory_space<vmem>>, vector<32x1xf32>
    tpu.vector_store %arg6[%c0_13, %c0_14], %16 {strides = array<i32>} : memref<32x1xf32, #tpu.memory_space<vmem>>, vector<32x1xf32>,
    %c0_15 = arith.constant 0 : index
    %18 = arith.index_cast %arg1 : i32 to index
    %c0_16 = arith.constant 0 : index
    %c0_17 = arith.constant 0 : index
    %19 = vector.load %arg4[%c0_15, %18, %c0_16, %c0_17] : memref<1x2x32x128xf32, #tpu.memory_space<vmem>>, vector<1x1x32x128xf32>
    %20 = vector.shape_cast %19 : vector<1x1x32x128xf32> to vector<32x128xf32>
    %21 = vector.shape_cast %6 : vector<32x128xf32> to vector<1x1x32x128xf32>
    tpu.vector_store %arg4[%c0_15, %18, %c0_16, %c0_17], %21 {strides = array<i32>} : memref<1x2x32x128xf32, #tpu.memory_space<vmem>>, vector<1x1x32x128xf32>,
    %c1_i32 = arith.constant 1 : i32
    %22 = arith.cmpi eq, %arg1, %c1_i32 : i32
    %23 = arith.extui %22 : i1 to i32
    %c0_i32_18 = arith.constant 0 : i32
    %24 = arith.cmpi ne, %23, %c0_i32_18 : i32
    scf.if %24 {
      %c0_19 = arith.constant 0 : index
      %c0_20 = arith.constant 0 : index
      %25 = vector.load %arg5[%c0_19, %c0_20] : memref<32x1xf32, #tpu.memory_space<vmem>>, vector<32x1xf32>
      %c0_21 = arith.constant 0 : index
      %c0_22 = arith.constant 0 : index
      %26 = vector.load %arg6[%c0_21, %c0_22] : memref<32x1xf32, #tpu.memory_space<vmem>>, vector<32x1xf32>
      %27 = vector.extract_strided_slice %25 {offsets = [0, 0], sizes = [8, 1], strides = [1, 1]} : vector<32x1xf32> to vector<8x1xf32>
      %28 = vector.extract_strided_slice %25 {offsets = [8, 0], sizes = [8, 1], strides = [1, 1]} : vector<32x1xf32> to vector<8x1xf32>
      %29 = arith.addf %27, %28 : vector<8x1xf32>
      %30 = vector.extract_strided_slice %25 {offsets = [16, 0], sizes = [8, 1], strides = [1, 1]} : vector<32x1xf32> to vector<8x1xf32>
      %31 = arith.addf %29, %30 : vector<8x1xf32>
      %32 = vector.extract_strided_slice %25 {offsets = [24, 0], sizes = [8, 1], strides = [1, 1]} : vector<32x1xf32> to vector<8x1xf32>
      %33 = arith.addf %31, %32 : vector<8x1xf32>
      %34 = vector.extract_strided_slice %26 {offsets = [0, 0], sizes = [8, 1], strides = [1, 1]} : vector<32x1xf32> to vector<8x1xf32>
      %35 = vector.extract_strided_slice %26 {offsets = [8, 0], sizes = [8, 1], strides = [1, 1]} : vector<32x1xf32> to vector<8x1xf32>
      %36 = arith.addf %34, %35 : vector<8x1xf32>
      %37 = vector.extract_strided_slice %26 {offsets = [16, 0], sizes = [8, 1], strides = [1, 1]} : vector<32x1xf32> to vector<8x1xf32>
      %38 = arith.addf %36, %37 : vector<8x1xf32>
      %39 = vector.extract_strided_slice %26 {offsets = [24, 0], sizes = [8, 1], strides = [1, 1]} : vector<32x1xf32> to vector<8x1xf32>
      %40 = arith.addf %38, %39 : vector<8x1xf32>
      %cst_23 = arith.constant 1.024000e+03 : f32
      %41 = vector.broadcast %cst_23 : f32 to vector<8x1xf32>
      %42 = arith.divf %33, %41 : vector<8x1xf32>
      %cst_24 = arith.constant 1.024000e+03 : f32
      %43 = vector.broadcast %cst_24 : f32 to vector<8x1xf32>
      %44 = arith.divf %40, %43 : vector<8x1xf32>
      %45 = arith.mulf %42, %42 : vector<8x1xf32>
      %46 = arith.subf %44, %45 : vector<8x1xf32>
      %cst_25 = arith.constant 9.99999974E-6 : f32
      %47 = vector.broadcast %cst_25 : f32 to vector<8x1xf32>
      %48 = arith.addf %46, %47 : vector<8x1xf32>
      %49 = math.rsqrt %48 : vector<8x1xf32>
      %50 = tpu.concatenate %42, %42, %42, %42 in 0 : vector<8x1xf32>, vector<8x1xf32>, vector<8x1xf32>, vector<8x1xf32> -> vector<32x1xf32>
      %51 = tpu.concatenate %49, %49, %49, %49 in 0 : vector<8x1xf32>, vector<8x1xf32>, vector<8x1xf32>, vector<8x1xf32> -> vector<32x1xf32>
      %c0_26 = arith.constant 0 : index
      %c0_27 = arith.constant 0 : index
      %c0_28 = arith.constant 0 : index
      %c0_29 = arith.constant 0 : index
      %52 = vector.load %arg4[%c0_26, %c0_27, %c0_28, %c0_29] : memref<1x2x32x128xf32, #tpu.memory_space<vmem>>, vector<1x2x32x128xf32>
      %53 = vector.shape_cast %52 : vector<1x2x32x128xf32> to vector<2x32x128xf32>
      %54 = vector.shape_cast %50 : vector<32x1xf32> to vector<1x32x1xf32>
      %55 = vector.broadcast %54 : vector<1x32x1xf32> to vector<2x32x128xf32>
      %56 = arith.subf %53, %55 : vector<2x32x128xf32>
      %57 = vector.shape_cast %51 : vector<32x1xf32> to vector<1x32x1xf32>
      %58 = vector.broadcast %57 : vector<1x32x1xf32> to vector<2x32x128xf32>
      %59 = arith.mulf %56, %58 : vector<2x32x128xf32>
      %cst_30 = arith.constant 0.000000e+00 : f32
      %60 = vector.broadcast %cst_30 : f32 to vector<2x32x128xf32>
      %61 = arith.maximumf %59, %60 : vector<2x32x128xf32>
      %c0_31 = arith.constant 0 : index
      %c0_32 = arith.constant 0 : index
      %c0_33 = arith.constant 0 : index
      %c0_34 = arith.constant 0 : index
      %62 = vector.load %arg4[%c0_31, %c0_32, %c0_33, %c0_34] : memref<1x2x32x128xf32, #tpu.memory_space<vmem>>, vector<1x2x32x128xf32>
      %63 = vector.shape_cast %62 : vector<1x2x32x128xf32> to vector<2x32x128xf32>
      %64 = vector.shape_cast %61 : vector<2x32x128xf32> to vector<1x2x32x128xf32>
      tpu.vector_store %arg4[%c0_31, %c0_32, %c0_33, %c0_34], %64 {strides = array<i32>} : memref<1x2x32x128xf32, #tpu.memory_space<vmem>>, vector<1x2x32x128xf32>,
    } else {
    }
    return
  }
  func.func @transform_0(%arg0: i32, %arg1: i32) -> (i32, i32) {
    %c0_i32 = arith.constant 0 : i32
    %c0_i32_0 = arith.constant 0 : i32
    %c0_i32_1 = arith.constant 0 : i32
    return %c0_i32, %c0_i32_0 : i32, i32
  }
  func.func @transform_1(%arg0: i32, %arg1: i32) -> (i32, i32, i32) {
    %c0_i32 = arith.constant 0 : i32
    %c0_i32_0 = arith.constant 0 : i32
    return %arg0, %c0_i32, %arg1 : i32, i32, i32
  }
  func.func @transform_2(%arg0: i32, %arg1: i32) -> (i32, i32, i32, i32) {
    %c0_i32 = arith.constant 0 : i32
    %c0_i32_0 = arith.constant 0 : i32
    %c0_i32_1 = arith.constant 0 : i32
    %c0_i32_2 = arith.constant 0 : i32
    return %arg0, %c0_i32, %c0_i32_0, %c0_i32_1 : i32, i32, i32, i32
  }
}

</mosaic_0001>

<bundles_post_ra>
// kernel: fractional_strided_conv_block.1
= control target key start
LH: loop header
LB: loop body
LE: loop exit
PB: predicated region body
PF: predicated region fallthrough
CT: control target
= control target key end

     0   :  { %s667_s9 = smov 0   ;;  %s669_s10 = smov 0   ;;  %s792_s0 = inlined_call_operand.vmem [shape: bf16[32,16], index: 0, kind: input, shape index: {}]   ;;  %s793_s1 = inlined_call_operand.vmem [shape: bf16[2,16,256], index: 1, kind: input, shape index: {}]   ;;  %s794_s2 = inlined_call_operand.vmem [shape: f32[2,2,32,128], index: 2, kind: output, shape index: {}]  }
   0x1   :  { %s671_s11 = smov 0   ;;  %s673_s12 = smov 0  }
   0x2   :  { %s675_s13 = smov 0   ;;  %s677_s14 = smov 0  }
   0x3   :  { %s679_s15 = smov 0  }
   0x4 LB: > { %s21_s16 = sadd.s32 1, %s640_s13  ;;  %s24_s17 = sadd.s32 1, %s644_s14  ;;  %s648_s15 = sphi %s679_s15, %s12_s15   ;;  %s644_s14 = sphi %s677_s14, %s800_s14   ;;  %s640_s13 = sphi %s675_s13, %s799_s13   ;;  %s636_s12 = sphi %s673_s12, %s798_s12   ;;  %s632_s11 = sphi %s671_s11, %s797_s11   ;;  %s628_s10 = sphi %s669_s10, %s796_s10   ;;  %s624_s9 = sphi %s667_s9, %s795_s9  }
   0x5   : > { %p22_p0 = scmp.ge.s32.totalorder %s21_s16, 2  ;;  %p61_p1 = scmp.ne.s32.totalorder %s628_s10, %s624_s9 }
   0x6   : > { %p62_p2 = scmp.eq.s32.totalorder %s648_s15, 0  ;;  %s54_s21 = sadd.s32 1, %s628_s10 }
   0x7   : > { %s802_s16 = smov (%p22_p0, %s21_s16), 0  ;;  %s804_s17 = smov (!%p22_p0, %s24_s17), %s644_s14 }
   0x8   : > { %p63_p3 = por %p62_p2, %p61_p1  ;;  %p26_p4 = scmp.ge.s32.totalorder %s804_s17, 2 }
   0x9   : > { %s50_s18 = ssub.s32 %s640_s13, %s802_s16  ;;  %p502_p6 = scmp.ge.s32.totalorder %s648_s15, 4 }
   0xa   : > { %s806_s17 = smov (%p26_p4, %s804_s17), 0 }
   0xb   : > { %s49_s19 = ssub.s32 %s644_s14, %s806_s17  ;;  %116 = sbr.rel (%p502_p6) target bundleno = 25 (0x19), region = 20 }
   0xc   : > { %s51_s20 = sor.u32 %s50_s18, %s49_s19 }
   0xd   : > { %p52_p5 = scmp.eq.s32.totalorder %s51_s20, 0 }
   0xf   : > { %s718_s22 = scalar_select %p52_p5, %s628_s10, %s54_s21  }
  0x12   : > { %119 = sbr.rel (!%p63_p3) target bundleno = 25 (0x19), region = 24  ;;  %s121_s23 = sand.u32 (%p63_p3), 1, %s628_s10  }
  0x13   : > { %s504_s24 = sshll.u32 (%p63_p3), %s644_s14, 2  ;;  %s503_s25 = sshll.u32 (%p63_p3), %s121_s23, 3 }
  0x14   : > { %s125_s26 = sadd.s32 (%p63_p3), %s640_s13, %s504_s24  ;;  %s123_s3 = scalar_lea.vmem (%p63_p3), [#allocation4], %s503_s25 }
  0x15   : > { %s505_s27 = sshll.u32 (%p63_p3), %s125_s26, 2 }
  0x16   : > { %s127_s30 = scalar_lea.vmem (%p63_p3), %s793_s1, %s505_s27 }
  0x17   : > { %v143_v0 = vld [vmem:[%s127_s30] sm:$0xf] (%p63_p3)  ;;  %v145_v1 = vld [vmem:[%s127_s30 + $0x8] sm:$0xf] (%p63_p3) }
  0x18   : > { %144 = vst [vmem:[%s123_s3] sm:$0xf] (%p63_p3), %v143_v0  ;;  %146 = vst [vmem:[%s123_s3 + $0x4] sm:$0xf] (%p63_p3), %v145_v1 }
  0x19 PF: > { %p506_p7 = scmp.ge.s32.totalorder %s648_s15, 1  ;;  %p172_p8 = scmp.lt.s32.totalorder %s648_s15, 5 }
  0x1b   : > { %p173_p9 = pnand %p506_p7, %p172_p8 }
  0x1c   : > { %s179_s4 = sand.u32 (!%p173_p9), 1, %s624_s9   ;;  %p200_p10 = scmp.lt.s32.totalorder (!%p173_p9), %s636_s12, 1 }
  0x1d   : > { %176 = sbr.rel (%p173_p9) target bundleno = 582 (0x246), region = 65  ;;  %s507_s5 = sshll.u32 (!%p173_p9), %s179_s4, 3 }
  0x1e   : > { %s181_s19 = scalar_lea.vmem (!%p173_p9), [#allocation4], %s507_s5  ;;  %p510_p11 = scmp.ne.s32.totalorder (!%p173_p9), %s632_s11, 0 }
  0x24   : > { %s808_s12 = smov (!%p200_p10, %s636_s12), 1  ;;  %209 = sbr.rel (%p510_p11) target bundleno = 43 (0x2b), region = 73 }
  0x25   : > { %s520_s6 = sshll.u32 %s808_s12, 6  ;;  %vm210_vm0 = vcmask (!%p510_p11), 7168   ;;  %v650_v2 = vmov (!%p510_p11), 0.0  }
  0x26   : > { %s735_s18 = scalar_lea.vmem %s794_s2, %s520_s6  ;;  %211 = vst.msk [vmem:[#allocation2] sm:$0xff] (!%p510_p11), %vm210_vm0, %v650_v2  ;;  %212 = vst.msk [vmem:[#allocation2 + $0x8] sm:$0xff] (!%p510_p11), %vm210_vm0, %v650_v2 }
  0x27   : > { %213 = vst.msk [vmem:[#allocation2 + $0x10] sm:$0xff] (!%p510_p11), %vm210_vm0, %v650_v2  ;;  %214 = vst.msk [vmem:[#allocation2 + $0x18] sm:$0xff] (!%p510_p11), %vm210_vm0, %v650_v2 }
  0x28   : > { %215 = vst.msk [vmem:[#allocation3] sm:$0xff] (!%p510_p11), %vm210_vm0, %v650_v2  ;;  %216 = vst.msk [vmem:[#allocation3 + $0x8] sm:$0xff] (!%p510_p11), %vm210_vm0, %v650_v2 }
  0x29   : > { %217 = vst.msk [vmem:[#allocation3 + $0x10] sm:$0xff] (!%p510_p11), %vm210_vm0, %v650_v2  ;;  %218 = vst.msk [vmem:[#allocation3 + $0x18] sm:$0xff] (!%p510_p11), %vm210_vm0, %v650_v2 }
  0x2b PF: > { %v588_v3 = vld [vmem:[%s181_s19] sm:$0xff]   ;;  %vm241_vm1 = vcmask 130048   ;;  %s516_s23 = sshll.u32 %s632_s11, 5  ;;  %vm313_vm2 = vcmask 7168   ;;  %p517_p12 = scmp.ne.s32.totalorder %s632_s11, 1 }
  0x2c   : > { %v589_v4 = vld [vmem:[%s792_s0] sm:$0xff]   ;;  %524 = vmatprep.subr.bf16.mxu0 %v588_v3  ;;  %v590_v5 = vld [vmem:[%s792_s0 + $0x8] sm:$0xff]   ;;  %s343_s24 = scalar_lea.vmem %s735_s18, %s516_s23  ;;  %v651_v41 = vmov (!%p517_p12), 0  }
  0x2d   : > { %525 = vmatpush3.bf16.msra.mxu0 %v588_v3  ;;  %526 = vmatprep.mubr.msk.bf16.mxu0 %vm241_vm1, %v589_v4  ;;  %v297_v15 = vld [vmem:[#allocation2] sm:$0xff]  ;;  %v298_v21 = vld [vmem:[#allocation2 + $0x8] sm:$0xff] }
  0x2e   : > { %v299_v14 = vld [vmem:[#allocation2 + $0x10] sm:$0xff]  ;;  %v300_v20 = vld [vmem:[#allocation2 + $0x18] sm:$0xff]  ;;  %591 = vset.pattern.permute.xlu0 (!%p517_p12), %v651_v41 }
  0x2f   : > { %v319_v26 = vld [vmem:[#allocation3 + $0x8] sm:$0xff]  ;;  %v318_v27 = vld [vmem:[#allocation3] sm:$0xff] }
  0x30   : > { %527 = vmatmul.mubr.msk.bf16.vlgmr.msra.gmra.mrb[0].mxu0 %vm241_vm1, %v590_v5  ;;  %v321_v32 = vld [vmem:[#allocation3 + $0x18] sm:$0xff]  ;;  %v320_v33 = vld [vmem:[#allocation3 + $0x10] sm:$0xff] }
 0x103   : > { %v528_v6 = vpop.f32.mrb[0].mxu0 }
 0x104   : > { %346 = vst [vmem:[%s343_s24 + $0x10] sm:$0xff] %v528_v6  ;;  %305 = vadd.xlane.f32.xlu1 %v528_v6  ;;  %v282_v7 = vpop.f32.mrb[1].mxu0  ;;  %v324_v13 = vmul.f32 %v528_v6, %v528_v6 }
 0x105   : > { %344 = vst [vmem:[%s343_s24] sm:$0xff] %v282_v7  ;;  %301 = vadd.xlane.f32.xlu0 %v282_v7  ;;  %v529_v8 = vpop.f32.mrb[2].mxu0  ;;  %v322_v11 = vmul.f32 %v282_v7, %v282_v7 }
 0x106   : > { %347 = vst [vmem:[%s343_s24 + $0x18] sm:$0xff] %v529_v8  ;;  %v285_v9 = vpop.f32.mrb[3].mxu0  ;;  %v325_v12 = vmul.f32 %v529_v8, %v529_v8 }
 0x107   : > { %345 = vst [vmem:[%s343_s24 + $0x8] sm:$0xff] %v285_v9  ;;  %v323_v10 = vmul.f32 %v285_v9, %v285_v9 }
 0x108   : > { %307 = vadd.xlane.f32.xlu1 %v529_v8 }
 0x109   : > { %303 = vadd.xlane.f32.xlu0 %v285_v9 }
 0x10c   : > { %328 = vadd.xlane.f32.xlu1 %v323_v10 }
 0x10d   : > { %326 = vadd.xlane.f32.xlu0 %v322_v11 }
 0x10e   : > { %v373_v60 = vld [vmem:[%s735_s18] sm:$0xff] (!%p517_p12)  ;;  %v374_v61 = vld [vmem:[%s735_s18 + $0x8] sm:$0xff] (!%p517_p12)  ;;  %v375_v62 = vld [vmem:[%s735_s18 + $0x10] sm:$0xff] (!%p517_p12) }
 0x10f   : > { %v376_v63 = vld [vmem:[%s735_s18 + $0x18] sm:$0xff] (!%p517_p12)  ;;  %v377_v0 = vld [vmem:[%s735_s18 + $0x20] sm:$0xff] (!%p517_p12)  ;;  %v378_v1 = vld [vmem:[%s735_s18 + $0x28] sm:$0xff] (!%p517_p12) }
 0x110   : > { %332 = vadd.xlane.f32.xlu1 %v325_v12  ;;  %v379_v2 = vld [vmem:[%s735_s18 + $0x30] sm:$0xff] (!%p517_p12)  ;;  %v380_v3 = vld [vmem:[%s735_s18 + $0x38] sm:$0xff] (!%p517_p12) }
 0x111   : > { %330 = vadd.xlane.f32.xlu0 %v324_v13 }
 0x191   : > { %v306_v16 = vpop.xlane.xlu1 %305 }
 0x192   : > { %v311_v17 = vadd.f32 %v306_v16, %v299_v14  ;;  %v302_v18 = vpop.xlane.xlu0 %301 }
 0x193   : > { %v309_v19 = vadd.f32 %v302_v18, %v297_v15 }
 0x194   : > { %316 = vst.msk [vmem:[#allocation2 + $0x10] sm:$0xff] %vm313_vm2, %v311_v17 }
 0x195   : > { %314 = vst.msk [vmem:[#allocation2] sm:$0xff] %vm313_vm2, %v309_v19  ;;  %v308_v22 = vpop.xlane.xlu1 %307 }
 0x196   : > { %v312_v23 = vadd.f32 %v308_v22, %v300_v20  ;;  %v304_v24 = vpop.xlane.xlu0 %303 }
 0x197   : > { %v310_v25 = vadd.f32 %v304_v24, %v298_v21 }
 0x198   : > { %317 = vst.msk [vmem:[#allocation2 + $0x18] sm:$0xff] %vm313_vm2, %v312_v23 }
 0x199   : > { %315 = vst.msk [vmem:[#allocation2 + $0x8] sm:$0xff] %vm313_vm2, %v310_v25  ;;  %v329_v28 = vpop.xlane.xlu1 %328 }
 0x19a   : > { %v335_v29 = vadd.f32 %v329_v28, %v319_v26  ;;  %v327_v30 = vpop.xlane.xlu0 %326 }
 0x19b   : > { %v334_v31 = vadd.f32 %v327_v30, %v318_v27  ;;  %351 = sbr.rel (%p517_p12) target bundleno = 582 (0x246), region = 77  ;;  %v354_v40 = vld [vmem:[#allocation2 + $0x10] sm:$0xff] (!%p517_p12) }
 0x19c   : > { %339 = vst.msk [vmem:[#allocation3 + $0x8] sm:$0xff] %vm313_vm2, %v335_v29  ;;  %v352_v38 = vld [vmem:[#allocation2] sm:$0xff] (!%p517_p12) }
 0x19d   : > { %338 = vst.msk [vmem:[#allocation3] sm:$0xff] %vm313_vm2, %v334_v31  ;;  %v333_v34 = vpop.xlane.xlu1 %332 }
 0x19e   : > { %v337_v35 = vadd.f32 %v333_v34, %v321_v32  ;;  %v331_v36 = vpop.xlane.xlu0 %330 }
 0x19f   : > { %v336_v37 = vadd.f32 %v331_v36, %v320_v33  ;;  %v355_v45 = vld [vmem:[#allocation2 + $0x18] sm:$0xff] (!%p517_p12) }
 0x1a0   : > { %341 = vst.msk [vmem:[#allocation3 + $0x18] sm:$0xff] %vm313_vm2, %v337_v35  ;;  %v353_v39 = vld [vmem:[#allocation2 + $0x8] sm:$0xff] (!%p517_p12) }
 0x1a1   : > { %340 = vst.msk [vmem:[#allocation3 + $0x10] sm:$0xff] %vm313_vm2, %v336_v37  ;;  %v360_v44 = vadd.f32 (!%p517_p12), %v353_v39, %v352_v38 }
 0x1a3   : > { %v357_v43 = vld [vmem:[#allocation3 + $0x8] sm:$0xff]  ;;  %v361_v49 = vadd.f32 %v360_v44, %v354_v40 }
 0x1a4   : > { %v356_v42 = vld [vmem:[#allocation3] sm:$0xff] }
 0x1a5   : > { %v363_v47 = vadd.f32 %v357_v43, %v356_v42  ;;  %v362_v51 = vadd.f32 %v361_v49, %v355_v45 }
 0x1a7   : > { %v359_v48 = vld [vmem:[#allocation3 + $0x18] sm:$0xff]  ;;  %v367_v53 = vmul.f32 0.0009765625, %v362_v51 }
 0x1a8   : > { %v358_v46 = vld [vmem:[#allocation3 + $0x10] sm:$0xff] }
 0x1a9   : > { %v364_v50 = vadd.f32 %v363_v47, %v358_v46  ;;  %383 = vperm.xlu0 %591, %v367_v53   ;;  %v369_v55 = vmul.f32 %v367_v53, %v367_v53 }
 0x1ab   : > { %v365_v52 = vadd.f32 %v364_v50, %v359_v48 }
 0x1ad   : > { %v368_v54 = vmul.f32 0.0009765625, %v365_v52 }
 0x1af   : > { %v370_v56 = vsub.f32 %v368_v54, %v369_v55 }
 0x1b1   : > { %v371_v57 = vadd.f32 1e-05, %v370_v56 }
 0x1b3   : > { %592 = vrsqrt.f32 %v371_v57 }
 0x1bd   : > { %v593_v58 = vpop.eup %592 }
 0x1be   : > { %396 = vperm.xlu0 %591, %v593_v58  }
 0x228   : > { %v384_v59 = vpop.permute.xlu0 %383 }
 0x229   : > { %v386_v4 = vsub.f32 %v373_v60, %v384_v59  ;;  %v387_v5 = vsub.f32 %v374_v61, %v384_v59  ;;  %v388_v6 = vsub.f32 %v375_v62, %v384_v59  ;;  %v389_v7 = vsub.f32 %v376_v63, %v384_v59 }
 0x22a   : > { %v390_v8 = vsub.f32 %v377_v0, %v384_v59  ;;  %v391_v9 = vsub.f32 %v378_v1, %v384_v59  ;;  %v392_v10 = vsub.f32 %v379_v2, %v384_v59  ;;  %v393_v11 = vsub.f32 %v380_v3, %v384_v59 }
 0x23d   : > { %v397_v12 = vpop.permute.xlu0 %396 }
 0x23e   : > { %v399_v13 = vmul.f32 %v397_v12, %v386_v4  ;;  %v400_v14 = vmul.f32 %v397_v12, %v387_v5  ;;  %v401_v15 = vmul.f32 %v397_v12, %v388_v6  ;;  %v402_v16 = vmul.f32 %v397_v12, %v389_v7 }
 0x23f   : > { %v403_v17 = vmul.f32 %v397_v12, %v390_v8  ;;  %v404_v18 = vmul.f32 %v397_v12, %v391_v9  ;;  %v405_v19 = vmul.f32 %v397_v12, %v392_v10  ;;  %v406_v20 = vmul.f32 %v397_v12, %v393_v11 }
 0x240   : > { %v407_v21 = vmax.f32 %v399_v13, 0.0  ;;  %v408_v22 = vmax.f32 %v400_v14, 0.0  ;;  %v409_v23 = vmax.f32 %v401_v15, 0.0  ;;  %v410_v24 = vmax.f32 %v402_v16, 0.0 }
 0x241   : > { %v411_v25 = vmax.f32 %v403_v17, 0.0  ;;  %v412_v26 = vmax.f32 %v404_v18, 0.0  ;;  %v413_v27 = vmax.f32 %v405_v19, 0.0  ;;  %v414_v28 = vmax.f32 %v406_v20, 0.0 }
 0x242   : > { %415 = vst [vmem:[%s735_s18] sm:$0xff] %v407_v21  ;;  %416 = vst [vmem:[%s735_s18 + $0x8] sm:$0xff] %v408_v22 }
 0x243   : > { %417 = vst [vmem:[%s735_s18 + $0x10] sm:$0xff] %v409_v23  ;;  %418 = vst [vmem:[%s735_s18 + $0x18] sm:$0xff] %v410_v24 }
 0x244   : > { %419 = vst [vmem:[%s735_s18 + $0x20] sm:$0xff] %v411_v25  ;;  %420 = vst [vmem:[%s735_s18 + $0x28] sm:$0xff] %v412_v26 }
 0x245   : > { %421 = vst [vmem:[%s735_s18 + $0x30] sm:$0xff] %v413_v27  ;;  %422 = vst [vmem:[%s735_s18 + $0x38] sm:$0xff] %v414_v28 }
 0x246 PF: > { %s12_s15 = sadd.s32 1, %s648_s15   ;;  %s795_s9 = smov %s628_s10 }
 0x247   : > { %p9_p13 = scmp.ge.s32.totalorder %s12_s15, 6   ;;  %s796_s10 = smov %s718_s22 }
 0x248   : > { %s797_s11 = smov %s640_s13  ;;  %s798_s12 = smov %s644_s14 }
 0x249   : > { %s799_s13 = smov %s802_s16  ;;  %s800_s14 = smov %s806_s17 }
 0x24a   :  { %11 = sbr.rel (!%p9_p13) target bundleno = 4 (0x4), region = 113 }

</bundles_post_ra>
